<compile_context>
chip_gen: v7x
topology: tpu7x:2x2x1
jax: 0.10.0
libtpu: 0.0.40
codegen_flags: <defaults>
</compile_context>

<pallas_src>
import math

import jax
import jax.numpy as jnp
from jax.experimental import pallas as pl
from jax.experimental.pallas import tpu as pltpu


# ----------------------------------------------------------------------------
# 1-D bilinear interpolation matrix (align_corners=False), plain JAX
# ----------------------------------------------------------------------------
def _linear_interp_matrix(in_size: int, out_size: int) -> jnp.ndarray:
    """P of shape (out_size, in_size) s.t. y = P @ x is 1-D linear resize."""
    scale = in_size / out_size
    dst = jnp.arange(out_size, dtype=jnp.float32)
    src = jnp.clip((dst + 0.5) * scale - 0.5, 0.0, float(in_size - 1))
    i0 = jnp.floor(src).astype(jnp.int32)
    i1 = jnp.minimum(i0 + 1, in_size - 1)
    w1 = src - i0.astype(jnp.float32)
    w0 = 1.0 - w1
    rows = jnp.arange(out_size)
    P = jnp.zeros((out_size, in_size), jnp.float32)
    P = P.at[rows, i0].add(w0)
    P = P.at[rows, i1].add(w1)
    return P


def _composed_interp_matrices(H, W, multiplier, n_stages):
    """Compose all n_stages separable bilinear resizes into one (Ho,H) and one (W,Wo)."""
    ph = jnp.eye(H, dtype=jnp.float32)
    pw = jnp.eye(W, dtype=jnp.float32)
    h, w = H, W
    for _ in range(n_stages):
        ho = int(math.floor(h * multiplier))
        wo = int(math.floor(w * multiplier))
        ph = jnp.matmul(_linear_interp_matrix(h, ho), ph, precision="highest")
        pw = jnp.matmul(_linear_interp_matrix(w, wo), pw, precision="highest")
        h, w = ho, wo
    return ph, pw.T  # (Ho, H), (W, Wo)


# ----------------------------------------------------------------------------
# Fused Pallas kernels
# ----------------------------------------------------------------------------
def _resize_kernel(ph_ref, pwt_ref, x_ref, o_ref):
    # ph_ref: (Ho,H)  pwt_ref: (W,Wo)  x_ref: (BN,C,H,W)  o_ref: (BN,C,Ho,Wo)
    bn, c_in, H, W = x_ref.shape
    Ho = ph_ref.shape[0]
    Wo = pwt_ref.shape[1]
    p = bn * c_in
    x = x_ref[...].reshape(p, H, W)                                    # major-dim merge only
    pwt = jnp.broadcast_to(pwt_ref[...], (p, W, Wo))
    u = jnp.einsum("phw,pwj->phj", x, pwt,
                   preferred_element_type=jnp.float32)                 # column pass
    ph = jnp.broadcast_to(ph_ref[...], (p, Ho, H))
    t = jnp.einsum("pih,phj->pij", ph, u,
                   preferred_element_type=jnp.float32)                 # row pass
    o_ref[...] = t.reshape(bn, c_in, Ho, Wo).astype(o_ref.dtype)


def _resize_mix_kernel(ph_ref, pwt_ref, w_ref, b_ref, x_ref, o_ref):
    # ph_ref: (Ho,H)  pwt_ref: (W,Wo)  w_ref: SMEM (C_out,C_in)  b_ref: SMEM (C_out,)
    # x_ref: (BN,C_in,H,W)  o_ref: (BN,C_out,Ho,Wo)
    bn, c_in, H, W = x_ref.shape
    Ho = ph_ref.shape[0]
    Wo = pwt_ref.shape[1]
    c_out = o_ref.shape[1]
    p = bn * c_in
    x = x_ref[...].reshape(p, H, W)
    pwt = jnp.broadcast_to(pwt_ref[...], (p, W, Wo))
    u = jnp.einsum("phw,pwj->phj", x, pwt,
                   preferred_element_type=jnp.float32)                 # column pass
    ph = jnp.broadcast_to(ph_ref[...], (p, Ho, H))
    t = jnp.einsum("pih,phj->pij", ph, u,
                   preferred_element_type=jnp.float32)                 # row pass
    t = t.reshape(bn, c_in, Ho, Wo)
    # fused 1x1 conv (channel remap) on the VPU: tiny-K contraction, MXU not worth it
    outs = []
    for o in range(c_out):
        acc = jnp.zeros((bn, Ho, Wo), jnp.float32)
        for c in range(c_in):
            acc = acc + w_ref[o, c] * t[:, c, :, :]
        outs.append(acc + b_ref[o])
    y = jnp.stack(outs, axis=1)                                        # (bn, c_out, Ho, Wo)
    o_ref[...] = y.astype(o_ref.dtype)


# ----------------------------------------------------------------------------
# Wrapper
# ----------------------------------------------------------------------------
def _pick_batch_block(N, per_item_bytes, target_bytes=2 * 1024 * 1024):
    """Largest divisor of N with block ~<= target bytes, keeping >= 2 grid steps."""
    bn = int(max(1, min(N, target_bytes // max(per_item_bytes, 1))))
    while N % bn:
        bn -= 1
    if N >= 2 and N // bn < 2:  # keep >= 2 grid steps so both v7x TensorCores get work
        bn = max(1, bn // 2)
        while N % bn:
            bn -= 1
    return bn


def spatial_rescale(x, ph, pwt, weight=None, bias=None):
    """x: (N,C_in,H,W); ph: (Ho,H); pwt: (W,Wo); weight: (C_out,C_in,1,1) or None."""
    N, C_in, H, W = x.shape
    Ho, Wo = int(ph.shape[0]), int(pwt.shape[1])
    remap = weight is not None
    C_out = int(weight.shape[0]) if remap else C_in

    per_n = 4 * (C_in * H * W + C_out * Ho * Wo)
    BN = _pick_batch_block(N, per_n)
    grid = (N // BN,)

    x_spec = pl.BlockSpec((BN, C_in, H, W), lambda i: (i, 0, 0, 0))
    o_spec = pl.BlockSpec((BN, C_out, Ho, Wo), lambda i: (i, 0, 0, 0))
    ph_spec = pl.BlockSpec((Ho, H), lambda i: (0, 0))
    pwt_spec = pl.BlockSpec((W, Wo), lambda i: (0, 0))
    params = pltpu.CompilerParams(dimension_semantics=("parallel",))

    if remap:
        w2 = weight.reshape(C_out, C_in).astype(jnp.float32)
        b1 = (jnp.zeros((C_out,), jnp.float32) if bias is None
              else bias.astype(jnp.float32).reshape(C_out))
        smem = pl.BlockSpec(memory_space=pltpu.MemorySpace.SMEM)
        return pl.pallas_call(
            _resize_mix_kernel,
            out_shape=jax.ShapeDtypeStruct((N, C_out, Ho, Wo), x.dtype),
            grid=grid,
            in_specs=[ph_spec, pwt_spec, smem, smem, x_spec],
            out_specs=o_spec,
            compiler_params=params,
        )(ph, pwt, w2, b1, x)

    return pl.pallas_call(
        _resize_kernel,
        out_shape=jax.ShapeDtypeStruct((N, C_in, Ho, Wo), x.dtype),
        grid=grid,
        in_specs=[ph_spec, pwt_spec, x_spec],
        out_specs=o_spec,
        compiler_params=params,
    )(ph, pwt, x)


# ----------------------------------------------------------------------------
# Module wrapper
# ----------------------------------------------------------------------------
class SpatialRescaler:
    def __init__(self, n_stages=1, method="bilinear", multiplier=0.5,
                 in_channels=3, out_channels=None, bias=False, key=None):
        assert n_stages >= 0
        assert method in ["nearest", "linear", "bilinear", "trilinear", "bicubic", "area"]
        assert method == "bilinear", "only the default 'bilinear' mode is implemented"
        self.n_stages = n_stages
        self.multiplier = multiplier
        self.remap_output = out_channels is not None
        self.weight = None
        self.bias = None
        if self.remap_output:
            key = jax.random.PRNGKey(1) if key is None else key
            kw, kb = jax.random.split(key)
            bound = 1.0 / math.sqrt(in_channels)  # PyTorch Conv2d default init (k=1)
            self.weight = jax.random.uniform(kw, (out_channels, in_channels, 1, 1),
                                             jnp.float32, -bound, bound)
            if bias:
                self.bias = jax.random.uniform(kb, (out_channels,), jnp.float32,
                                               -bound, bound)

    def __call__(self, x):
        _, _, H, W = x.shape
        if self.n_stages == 0 and not self.remap_output:
            return x
        ph, pwt = _composed_interp_matrices(H, W, self.multiplier, self.n_stages)
        return spatial_rescale(x, ph, pwt,
                               self.weight if self.remap_output else None,
                               self.bias)

    def encode(self, x):
        return self(x)


# ----------------------------------------------------------------------------
# pure-JAX reference (sequential stages, full precision) for verification
# ----------------------------------------------------------------------------
def _reference(x, model: SpatialRescaler):
    y = x
    for _ in range(model.n_stages):
        _, _, h, w = y.shape
        ho = int(math.floor(h * model.multiplier))
        wo = int(math.floor(w * model.multiplier))
        ph = _linear_interp_matrix(h, ho)
        pw = _linear_interp_matrix(w, wo)
        y = jnp.einsum("ih,nchw,jw->ncij", ph, y, pw, precision="highest")
    if model.remap_output:
        w2 = model.weight.reshape(model.weight.shape[0], model.weight.shape[1])
        y = jnp.einsum("oc,nchw->nohw", w2, y, precision="highest")
        if model.bias is not None:
            y = y + model.bias[None, :, None, None]
    return y


if __name__ == "__main__":
    key = jax.random.PRNGKey(0)
    x = jax.random.normal(key, (2, 4, 16, 16), jnp.float32)  # NCHW

    # config 1: one resize stage + 1x1 conv remap 4 -> 8 channels (with bias)
    m1 = SpatialRescaler(n_stages=1, method="bilinear", multiplier=0.5,
                         in_channels=4, out_channels=8, bias=True,
                         key=jax.random.PRNGKey(1))
    y1 = jax.block_until_ready(m1(x))
    r1 = _reference(x, m1)
    assert y1.shape == (2, 8, 8, 8), y1.shape
    assert jnp.allclose(y1, r1, atol=5e-2, rtol=5e-2), float(jnp.max(jnp.abs(y1 - r1)))

    # config 2: two resize stages fused into one kernel, no channel remap
    m2 = SpatialRescaler(n_stages=2, method="bilinear", multiplier=0.5, in_channels=4)
    y2 = jax.block_until_ready(m2(x))
    r2 = _reference(x, m2)
    assert y2.shape == (2, 4, 4, 4), y2.shape
    assert jnp.allclose(y2, r2, atol=5e-2, rtol=5e-2), float(jnp.max(jnp.abs(y2 - r2)))

    print("KERNEL_OK")
</pallas_src>

<mosaic_0001>
module attributes {stable_mosaic.version = 11 : i64} {
  func.func @_resize_mix_kernel(%arg0: i32, %arg1: memref<8x16xf32, #tpu.memory_space<vmem>>, %arg2: memref<16x8xf32, #tpu.memory_space<vmem>>, %arg3: memref<8x4xf32, #tpu.memory_space<smem>>, %arg4: memref<8xf32, #tpu.memory_space<smem>>, %arg5: memref<1x4x16x16xf32, #tpu.memory_space<vmem>>, %arg6: memref<1x8x8x8xf32, #tpu.memory_space<vmem>>) attributes {dimension_semantics = [#tpu.dimension_semantics<parallel>], iteration_bounds = array<i64: 2>, scalar_prefetch = 0 : i64, scratch_operands = 0 : i64, tpu.core_type = #tpu.core_type<tc>, window_params = [{pipeline_mode = #tpu.pipeline_mode<synchronous>, transform_indices = @transform_0, window_bounds = array<i64: 8, 16>}, {pipeline_mode = #tpu.pipeline_mode<synchronous>, transform_indices = @transform_1, window_bounds = array<i64: 16, 8>}, {transform_indices = @transform_2, window_bounds = array<i64: 8, 4>}, {transform_indices = @transform_3, window_bounds = array<i64: 8>}, {transform_indices = @transform_4, window_bounds = array<i64: 1, 4, 16, 16>}, {transform_indices = @transform_5, window_bounds = array<i64: 1, 8, 8, 8>}]} {
    %c0 = arith.constant 0 : index
    %c0_0 = arith.constant 0 : index
    %c0_1 = arith.constant 0 : index
    %c0_2 = arith.constant 0 : index
    %0 = vector.load %arg5[%c0, %c0_0, %c0_1, %c0_2] : memref<1x4x16x16xf32, #tpu.memory_space<vmem>>, vector<1x4x16x16xf32>
    %1 = vector.shape_cast %0 : vector<1x4x16x16xf32> to vector<4x16x16xf32>
    %c0_3 = arith.constant 0 : index
    %c0_4 = arith.constant 0 : index
    %2 = vector.load %arg2[%c0_3, %c0_4] : memref<16x8xf32, #tpu.memory_space<vmem>>, vector<16x8xf32>
    %3 = vector.shape_cast %2 : vector<16x8xf32> to vector<1x16x8xf32>
    %4 = vector.broadcast %3 : vector<1x16x8xf32> to vector<4x16x8xf32>
    "tpu.trace_start"() <{level = 10 : i32, message = "phw,pwj->phj"}> : () -> ()
    %cst = arith.constant dense<0.000000e+00> : vector<4x16x8xf32>
    %5 = tpu.matmul %1, %4, %cst {dimension_numbers = #tpu.dot_dimension_numbers<[2], [1], [1], [2], [0, 0, 0, 1, 1, 2], [0], [0]>} : vector<4x16x16xf32>, vector<4x16x8xf32>, vector<4x16x8xf32> -> vector<4x16x8xf32>
    "tpu.trace_stop"() : () -> ()
    %c0_5 = arith.constant 0 : index
    %c0_6 = arith.constant 0 : index
    %6 = vector.load %arg1[%c0_5, %c0_6] : memref<8x16xf32, #tpu.memory_space<vmem>>, vector<8x16xf32>
    %7 = vector.shape_cast %6 : vector<8x16xf32> to vector<1x8x16xf32>
    %8 = vector.broadcast %7 : vector<1x8x16xf32> to vector<4x8x16xf32>
    "tpu.trace_start"() <{level = 10 : i32, message = "pih,phj->pij"}> : () -> ()
    %cst_7 = arith.constant dense<0.000000e+00> : vector<4x8x8xf32>
    %9 = tpu.matmul %8, %5, %cst_7 {dimension_numbers = #tpu.dot_dimension_numbers<[2], [1], [1], [2], [0, 0, 0, 1, 1, 2], [0], [0]>} : vector<4x8x16xf32>, vector<4x16x8xf32>, vector<4x8x8xf32> -> vector<4x8x8xf32>
    "tpu.trace_stop"() : () -> ()
    %10 = vector.shape_cast %9 : vector<4x8x8xf32> to vector<1x4x8x8xf32>
    %cst_8 = arith.constant 0.000000e+00 : f32
    %11 = vector.broadcast %cst_8 : f32 to vector<1x8x8xf32>
    %c0_9 = arith.constant 0 : index
    %c0_10 = arith.constant 0 : index
    %12 = memref.load %arg3[%c0_9, %c0_10] : memref<8x4xf32, #tpu.memory_space<smem>>
    %13 = vector.extract_strided_slice %10 {offsets = [0, 0, 0, 0], sizes = [1, 1, 8, 8], strides = [1, 1, 1, 1]} : vector<1x4x8x8xf32> to vector<1x1x8x8xf32>
    %14 = vector.shape_cast %13 : vector<1x1x8x8xf32> to vector<1x8x8xf32>
    %15 = vector.broadcast %12 : f32 to vector<1x8x8xf32>
    %16 = arith.mulf %15, %14 : vector<1x8x8xf32>
    %17 = arith.addf %11, %16 : vector<1x8x8xf32>
    %c0_11 = arith.constant 0 : index
    %c1 = arith.constant 1 : index
    %18 = memref.load %arg3[%c0_11, %c1] : memref<8x4xf32, #tpu.memory_space<smem>>
    %19 = vector.extract_strided_slice %10 {offsets = [0, 1, 0, 0], sizes = [1, 1, 8, 8], strides = [1, 1, 1, 1]} : vector<1x4x8x8xf32> to vector<1x1x8x8xf32>
    %20 = vector.shape_cast %19 : vector<1x1x8x8xf32> to vector<1x8x8xf32>
    %21 = vector.broadcast %18 : f32 to vector<1x8x8xf32>
    %22 = arith.mulf %21, %20 : vector<1x8x8xf32>
    %23 = arith.addf %17, %22 : vector<1x8x8xf32>
    %c0_12 = arith.constant 0 : index
    %c2 = arith.constant 2 : index
    %24 = memref.load %arg3[%c0_12, %c2] : memref<8x4xf32, #tpu.memory_space<smem>>
    %25 = vector.extract_strided_slice %10 {offsets = [0, 2, 0, 0], sizes = [1, 1, 8, 8], strides = [1, 1, 1, 1]} : vector<1x4x8x8xf32> to vector<1x1x8x8xf32>
    %26 = vector.shape_cast %25 : vector<1x1x8x8xf32> to vector<1x8x8xf32>
    %27 = vector.broadcast %24 : f32 to vector<1x8x8xf32>
    %28 = arith.mulf %27, %26 : vector<1x8x8xf32>
    %29 = arith.addf %23, %28 : vector<1x8x8xf32>
    %c0_13 = arith.constant 0 : index
    %c3 = arith.constant 3 : index
    %30 = memref.load %arg3[%c0_13, %c3] : memref<8x4xf32, #tpu.memory_space<smem>>
    %31 = vector.extract_strided_slice %10 {offsets = [0, 3, 0, 0], sizes = [1, 1, 8, 8], strides = [1, 1, 1, 1]} : vector<1x4x8x8xf32> to vector<1x1x8x8xf32>
    %32 = vector.shape_cast %31 : vector<1x1x8x8xf32> to vector<1x8x8xf32>
    %33 = vector.broadcast %30 : f32 to vector<1x8x8xf32>
    %34 = arith.mulf %33, %32 : vector<1x8x8xf32>
    %35 = arith.addf %29, %34 : vector<1x8x8xf32>
    %c0_14 = arith.constant 0 : index
    %36 = memref.load %arg4[%c0_14] : memref<8xf32, #tpu.memory_space<smem>>
    %37 = vector.broadcast %36 : f32 to vector<1x8x8xf32>
    %38 = arith.addf %35, %37 : vector<1x8x8xf32>
    %cst_15 = arith.constant 0.000000e+00 : f32
    %39 = vector.broadcast %cst_15 : f32 to vector<1x8x8xf32>
    %c1_16 = arith.constant 1 : index
    %c0_17 = arith.constant 0 : index
    %40 = memref.load %arg3[%c1_16, %c0_17] : memref<8x4xf32, #tpu.memory_space<smem>>
    %41 = vector.extract_strided_slice %10 {offsets = [0, 0, 0, 0], sizes = [1, 1, 8, 8], strides = [1, 1, 1, 1]} : vector<1x4x8x8xf32> to vector<1x1x8x8xf32>
    %42 = vector.shape_cast %41 : vector<1x1x8x8xf32> to vector<1x8x8xf32>
    %43 = vector.broadcast %40 : f32 to vector<1x8x8xf32>
    %44 = arith.mulf %43, %42 : vector<1x8x8xf32>
    %45 = arith.addf %39, %44 : vector<1x8x8xf32>
    %c1_18 = arith.constant 1 : index
    %c1_19 = arith.constant 1 : index
    %46 = memref.load %arg3[%c1_18, %c1_19] : memref<8x4xf32, #tpu.memory_space<smem>>
    %47 = vector.extract_strided_slice %10 {offsets = [0, 1, 0, 0], sizes = [1, 1, 8, 8], strides = [1, 1, 1, 1]} : vector<1x4x8x8xf32> to vector<1x1x8x8xf32>
    %48 = vector.shape_cast %47 : vector<1x1x8x8xf32> to vector<1x8x8xf32>
    %49 = vector.broadcast %46 : f32 to vector<1x8x8xf32>
    %50 = arith.mulf %49, %48 : vector<1x8x8xf32>
    %51 = arith.addf %45, %50 : vector<1x8x8xf32>
    %c1_20 = arith.constant 1 : index
    %c2_21 = arith.constant 2 : index
    %52 = memref.load %arg3[%c1_20, %c2_21] : memref<8x4xf32, #tpu.memory_space<smem>>
    %53 = vector.extract_strided_slice %10 {offsets = [0, 2, 0, 0], sizes = [1, 1, 8, 8], strides = [1, 1, 1, 1]} : vector<1x4x8x8xf32> to vector<1x1x8x8xf32>
    %54 = vector.shape_cast %53 : vector<1x1x8x8xf32> to vector<1x8x8xf32>
    %55 = vector.broadcast %52 : f32 to vector<1x8x8xf32>
    %56 = arith.mulf %55, %54 : vector<1x8x8xf32>
    %57 = arith.addf %51, %56 : vector<1x8x8xf32>
    %c1_22 = arith.constant 1 : index
    %c3_23 = arith.constant 3 : index
    %58 = memref.load %arg3[%c1_22, %c3_23] : memref<8x4xf32, #tpu.memory_space<smem>>
    %59 = vector.extract_strided_slice %10 {offsets = [0, 3, 0, 0], sizes = [1, 1, 8, 8], strides = [1, 1, 1, 1]} : vector<1x4x8x8xf32> to vector<1x1x8x8xf32>
    %60 = vector.shape_cast %59 : vector<1x1x8x8xf32> to vector<1x8x8xf32>
    %61 = vector.broadcast %58 : f32 to vector<1x8x8xf32>
    %62 = arith.mulf %61, %60 : vector<1x8x8xf32>
    %63 = arith.addf %57, %62 : vector<1x8x8xf32>
    %c1_24 = arith.constant 1 : index
    %64 = memref.load %arg4[%c1_24] : memref<8xf32, #tpu.memory_space<smem>>
    %65 = vector.broadcast %64 : f32 to vector<1x8x8xf32>
    %66 = arith.addf %63, %65 : vector<1x8x8xf32>
    %cst_25 = arith.constant 0.000000e+00 : f32
    %67 = vector.broadcast %cst_25 : f32 to vector<1x8x8xf32>
    %c2_26 = arith.constant 2 : index
    %c0_27 = arith.constant 0 : index
    %68 = memref.load %arg3[%c2_26, %c0_27] : memref<8x4xf32, #tpu.memory_space<smem>>
    %69 = vector.extract_strided_slice %10 {offsets = [0, 0, 0, 0], sizes = [1, 1, 8, 8], strides = [1, 1, 1, 1]} : vector<1x4x8x8xf32> to vector<1x1x8x8xf32>
    %70 = vector.shape_cast %69 : vector<1x1x8x8xf32> to vector<1x8x8xf32>
    %71 = vector.broadcast %68 : f32 to vector<1x8x8xf32>
    %72 = arith.mulf %71, %70 : vector<1x8x8xf32>
    %73 = arith.addf %67, %72 : vector<1x8x8xf32>
    %c2_28 = arith.constant 2 : index
    %c1_29 = arith.constant 1 : index
    %74 = memref.load %arg3[%c2_28, %c1_29] : memref<8x4xf32, #tpu.memory_space<smem>>
    %75 = vector.extract_strided_slice %10 {offsets = [0, 1, 0, 0], sizes = [1, 1, 8, 8], strides = [1, 1, 1, 1]} : vector<1x4x8x8xf32> to vector<1x1x8x8xf32>
    %76 = vector.shape_cast %75 : vector<1x1x8x8xf32> to vector<1x8x8xf32>
    %77 = vector.broadcast %74 : f32 to vector<1x8x8xf32>
    %78 = arith.mulf %77, %76 : vector<1x8x8xf32>
    %79 = arith.addf %73, %78 : vector<1x8x8xf32>
    %c2_30 = arith.constant 2 : index
    %c2_31 = arith.constant 2 : index
    %80 = memref.load %arg3[%c2_30, %c2_31] : memref<8x4xf32, #tpu.memory_space<smem>>
    %81 = vector.extract_strided_slice %10 {offsets = [0, 2, 0, 0], sizes = [1, 1, 8, 8], strides = [1, 1, 1, 1]} : vector<1x4x8x8xf32> to vector<1x1x8x8xf32>
    %82 = vector.shape_cast %81 : vector<1x1x8x8xf32> to vector<1x8x8xf32>
    %83 = vector.broadcast %80 : f32 to vector<1x8x8xf32>
    %84 = arith.mulf %83, %82 : vector<1x8x8xf32>
    %85 = arith.addf %79, %84 : vector<1x8x8xf32>
    %c2_32 = arith.constant 2 : index
    %c3_33 = arith.constant 3 : index
    %86 = memref.load %arg3[%c2_32, %c3_33] : memref<8x4xf32, #tpu.memory_space<smem>>
    %87 = vector.extract_strided_slice %10 {offsets = [0, 3, 0, 0], sizes = [1, 1, 8, 8], strides = [1, 1, 1, 1]} : vector<1x4x8x8xf32> to vector<1x1x8x8xf32>
    %88 = vector.shape_cast %87 : vector<1x1x8x8xf32> to vector<1x8x8xf32>
    %89 = vector.broadcast %86 : f32 to vector<1x8x8xf32>
    %90 = arith.mulf %89, %88 : vector<1x8x8xf32>
    %91 = arith.addf %85, %90 : vector<1x8x8xf32>
    %c2_34 = arith.constant 2 : index
    %92 = memref.load %arg4[%c2_34] : memref<8xf32, #tpu.memory_space<smem>>
    %93 = vector.broadcast %92 : f32 to vector<1x8x8xf32>
    %94 = arith.addf %91, %93 : vector<1x8x8xf32>
    %cst_35 = arith.constant 0.000000e+00 : f32
    %95 = vector.broadcast %cst_35 : f32 to vector<1x8x8xf32>
    %c3_36 = arith.constant 3 : index
    %c0_37 = arith.constant 0 : index
    %96 = memref.load %arg3[%c3_36, %c0_37] : memref<8x4xf32, #tpu.memory_space<smem>>
    %97 = vector.extract_strided_slice %10 {offsets = [0, 0, 0, 0], sizes = [1, 1, 8, 8], strides = [1, 1, 1, 1]} : vector<1x4x8x8xf32> to vector<1x1x8x8xf32>
    %98 = vector.shape_cast %97 : vector<1x1x8x8xf32> to vector<1x8x8xf32>
    %99 = vector.broadcast %96 : f32 to vector<1x8x8xf32>
    %100 = arith.mulf %99, %98 : vector<1x8x8xf32>
    %101 = arith.addf %95, %100 : vector<1x8x8xf32>
    %c3_38 = arith.constant 3 : index
    %c1_39 = arith.constant 1 : index
    %102 = memref.load %arg3[%c3_38, %c1_39] : memref<8x4xf32, #tpu.memory_space<smem>>
    %103 = vector.extract_strided_slice %10 {offsets = [0, 1, 0, 0], sizes = [1, 1, 8, 8], strides = [1, 1, 1, 1]} : vector<1x4x8x8xf32> to vector<1x1x8x8xf32>
    %104 = vector.shape_cast %103 : vector<1x1x8x8xf32> to vector<1x8x8xf32>
    %105 = vector.broadcast %102 : f32 to vector<1x8x8xf32>
    %106 = arith.mulf %105, %104 : vector<1x8x8xf32>
    %107 = arith.addf %101, %106 : vector<1x8x8xf32>
    %c3_40 = arith.constant 3 : index
    %c2_41 = arith.constant 2 : index
    %108 = memref.load %arg3[%c3_40, %c2_41] : memref<8x4xf32, #tpu.memory_space<smem>>
    %109 = vector.extract_strided_slice %10 {offsets = [0, 2, 0, 0], sizes = [1, 1, 8, 8], strides = [1, 1, 1, 1]} : vector<1x4x8x8xf32> to vector<1x1x8x8xf32>
    %110 = vector.shape_cast %109 : vector<1x1x8x8xf32> to vector<1x8x8xf32>
    %111 = vector.broadcast %108 : f32 to vector<1x8x8xf32>
    %112 = arith.mulf %111, %110 : vector<1x8x8xf32>
    %113 = arith.addf %107, %112 : vector<1x8x8xf32>
    %c3_42 = arith.constant 3 : index
    %c3_43 = arith.constant 3 : index
    %114 = memref.load %arg3[%c3_42, %c3_43] : memref<8x4xf32, #tpu.memory_space<smem>>
    %115 = vector.extract_strided_slice %10 {offsets = [0, 3, 0, 0], sizes = [1, 1, 8, 8], strides = [1, 1, 1, 1]} : vector<1x4x8x8xf32> to vector<1x1x8x8xf32>
    %116 = vector.shape_cast %115 : vector<1x1x8x8xf32> to vector<1x8x8xf32>
    %117 = vector.broadcast %114 : f32 to vector<1x8x8xf32>
    %118 = arith.mulf %117, %116 : vector<1x8x8xf32>
    %119 = arith.addf %113, %118 : vector<1x8x8xf32>
    %c3_44 = arith.constant 3 : index
    %120 = memref.load %arg4[%c3_44] : memref<8xf32, #tpu.memory_space<smem>>
    %121 = vector.broadcast %120 : f32 to vector<1x8x8xf32>
    %122 = arith.addf %119, %121 : vector<1x8x8xf32>
    %cst_45 = arith.constant 0.000000e+00 : f32
    %123 = vector.broadcast %cst_45 : f32 to vector<1x8x8xf32>
    %c4 = arith.constant 4 : index
    %c0_46 = arith.constant 0 : index
    %124 = memref.load %arg3[%c4, %c0_46] : memref<8x4xf32, #tpu.memory_space<smem>>
    %125 = vector.extract_strided_slice %10 {offsets = [0, 0, 0, 0], sizes = [1, 1, 8, 8], strides = [1, 1, 1, 1]} : vector<1x4x8x8xf32> to vector<1x1x8x8xf32>
    %126 = vector.shape_cast %125 : vector<1x1x8x8xf32> to vector<1x8x8xf32>
    %127 = vector.broadcast %124 : f32 to vector<1x8x8xf32>
    %128 = arith.mulf %127, %126 : vector<1x8x8xf32>
    %129 = arith.addf %123, %128 : vector<1x8x8xf32>
    %c4_47 = arith.constant 4 : index
    %c1_48 = arith.constant 1 : index
    %130 = memref.load %arg3[%c4_47, %c1_48] : memref<8x4xf32, #tpu.memory_space<smem>>
    %131 = vector.extract_strided_slice %10 {offsets = [0, 1, 0, 0], sizes = [1, 1, 8, 8], strides = [1, 1, 1, 1]} : vector<1x4x8x8xf32> to vector<1x1x8x8xf32>
    %132 = vector.shape_cast %131 : vector<1x1x8x8xf32> to vector<1x8x8xf32>
    %133 = vector.broadcast %130 : f32 to vector<1x8x8xf32>
    %134 = arith.mulf %133, %132 : vector<1x8x8xf32>
    %135 = arith.addf %129, %134 : vector<1x8x8xf32>
    %c4_49 = arith.constant 4 : index
    %c2_50 = arith.constant 2 : index
    %136 = memref.load %arg3[%c4_49, %c2_50] : memref<8x4xf32, #tpu.memory_space<smem>>
    %137 = vector.extract_strided_slice %10 {offsets = [0, 2, 0, 0], sizes = [1, 1, 8, 8], strides = [1, 1, 1, 1]} : vector<1x4x8x8xf32> to vector<1x1x8x8xf32>
    %138 = vector.shape_cast %137 : vector<1x1x8x8xf32> to vector<1x8x8xf32>
    %139 = vector.broadcast %136 : f32 to vector<1x8x8xf32>
    %140 = arith.mulf %139, %138 : vector<1x8x8xf32>
    %141 = arith.addf %135, %140 : vector<1x8x8xf32>
    %c4_51 = arith.constant 4 : index
    %c3_52 = arith.constant 3 : index
    %142 = memref.load %arg3[%c4_51, %c3_52] : memref<8x4xf32, #tpu.memory_space<smem>>
    %143 = vector.extract_strided_slice %10 {offsets = [0, 3, 0, 0], sizes = [1, 1, 8, 8], strides = [1, 1, 1, 1]} : vector<1x4x8x8xf32> to vector<1x1x8x8xf32>
    %144 = vector.shape_cast %143 : vector<1x1x8x8xf32> to vector<1x8x8xf32>
    %145 = vector.broadcast %142 : f32 to vector<1x8x8xf32>
    %146 = arith.mulf %145, %144 : vector<1x8x8xf32>
    %147 = arith.addf %141, %146 : vector<1x8x8xf32>
    %c4_53 = arith.constant 4 : index
    %148 = memref.load %arg4[%c4_53] : memref<8xf32, #tpu.memory_space<smem>>
    %149 = vector.broadcast %148 : f32 to vector<1x8x8xf32>
    %150 = arith.addf %147, %149 : vector<1x8x8xf32>
    %cst_54 = arith.constant 0.000000e+00 : f32
    %151 = vector.broadcast %cst_54 : f32 to vector<1x8x8xf32>
    %c5 = arith.constant 5 : index
    %c0_55 = arith.constant 0 : index
    %152 = memref.load %arg3[%c5, %c0_55] : memref<8x4xf32, #tpu.memory_space<smem>>
    %153 = vector.extract_strided_slice %10 {offsets = [0, 0, 0, 0], sizes = [1, 1, 8, 8], strides = [1, 1, 1, 1]} : vector<1x4x8x8xf32> to vector<1x1x8x8xf32>
    %154 = vector.shape_cast %153 : vector<1x1x8x8xf32> to vector<1x8x8xf32>
    %155 = vector.broadcast %152 : f32 to vector<1x8x8xf32>
    %156 = arith.mulf %155, %154 : vector<1x8x8xf32>
    %157 = arith.addf %151, %156 : vector<1x8x8xf32>
    %c5_56 = arith.constant 5 : index
    %c1_57 = arith.constant 1 : index
    %158 = memref.load %arg3[%c5_56, %c1_57] : memref<8x4xf32, #tpu.memory_space<smem>>
    %159 = vector.extract_strided_slice %10 {offsets = [0, 1, 0, 0], sizes = [1, 1, 8, 8], strides = [1, 1, 1, 1]} : vector<1x4x8x8xf32> to vector<1x1x8x8xf32>
    %160 = vector.shape_cast %159 : vector<1x1x8x8xf32> to vector<1x8x8xf32>
    %161 = vector.broadcast %158 : f32 to vector<1x8x8xf32>
    %162 = arith.mulf %161, %160 : vector<1x8x8xf32>
    %163 = arith.addf %157, %162 : vector<1x8x8xf32>
    %c5_58 = arith.constant 5 : index
    %c2_59 = arith.constant 2 : index
    %164 = memref.load %arg3[%c5_58, %c2_59] : memref<8x4xf32, #tpu.memory_space<smem>>
    %165 = vector.extract_strided_slice %10 {offsets = [0, 2, 0, 0], sizes = [1, 1, 8, 8], strides = [1, 1, 1, 1]} : vector<1x4x8x8xf32> to vector<1x1x8x8xf32>
    %166 = vector.shape_cast %165 : vector<1x1x8x8xf32> to vector<1x8x8xf32>
    %167 = vector.broadcast %164 : f32 to vector<1x8x8xf32>
    %168 = arith.mulf %167, %166 : vector<1x8x8xf32>
    %169 = arith.addf %163, %168 : vector<1x8x8xf32>
    %c5_60 = arith.constant 5 : index
    %c3_61 = arith.constant 3 : index
    %170 = memref.load %arg3[%c5_60, %c3_61] : memref<8x4xf32, #tpu.memory_space<smem>>
    %171 = vector.extract_strided_slice %10 {offsets = [0, 3, 0, 0], sizes = [1, 1, 8, 8], strides = [1, 1, 1, 1]} : vector<1x4x8x8xf32> to vector<1x1x8x8xf32>
    %172 = vector.shape_cast %171 : vector<1x1x8x8xf32> to vector<1x8x8xf32>
    %173 = vector.broadcast %170 : f32 to vector<1x8x8xf32>
    %174 = arith.mulf %173, %172 : vector<1x8x8xf32>
    %175 = arith.addf %169, %174 : vector<1x8x8xf32>
    %c5_62 = arith.constant 5 : index
    %176 = memref.load %arg4[%c5_62] : memref<8xf32, #tpu.memory_space<smem>>
    %177 = vector.broadcast %176 : f32 to vector<1x8x8xf32>
    %178 = arith.addf %175, %177 : vector<1x8x8xf32>
    %cst_63 = arith.constant 0.000000e+00 : f32
    %179 = vector.broadcast %cst_63 : f32 to vector<1x8x8xf32>
    %c6 = arith.constant 6 : index
    %c0_64 = arith.constant 0 : index
    %180 = memref.load %arg3[%c6, %c0_64] : memref<8x4xf32, #tpu.memory_space<smem>>
    %181 = vector.extract_strided_slice %10 {offsets = [0, 0, 0, 0], sizes = [1, 1, 8, 8], strides = [1, 1, 1, 1]} : vector<1x4x8x8xf32> to vector<1x1x8x8xf32>
    %182 = vector.shape_cast %181 : vector<1x1x8x8xf32> to vector<1x8x8xf32>
    %183 = vector.broadcast %180 : f32 to vector<1x8x8xf32>
    %184 = arith.mulf %183, %182 : vector<1x8x8xf32>
    %185 = arith.addf %179, %184 : vector<1x8x8xf32>
    %c6_65 = arith.constant 6 : index
    %c1_66 = arith.constant 1 : index
    %186 = memref.load %arg3[%c6_65, %c1_66] : memref<8x4xf32, #tpu.memory_space<smem>>
    %187 = vector.extract_strided_slice %10 {offsets = [0, 1, 0, 0], sizes = [1, 1, 8, 8], strides = [1, 1, 1, 1]} : vector<1x4x8x8xf32> to vector<1x1x8x8xf32>
    %188 = vector.shape_cast %187 : vector<1x1x8x8xf32> to vector<1x8x8xf32>
    %189 = vector.broadcast %186 : f32 to vector<1x8x8xf32>
    %190 = arith.mulf %189, %188 : vector<1x8x8xf32>
    %191 = arith.addf %185, %190 : vector<1x8x8xf32>
    %c6_67 = arith.constant 6 : index
    %c2_68 = arith.constant 2 : index
    %192 = memref.load %arg3[%c6_67, %c2_68] : memref<8x4xf32, #tpu.memory_space<smem>>
    %193 = vector.extract_strided_slice %10 {offsets = [0, 2, 0, 0], sizes = [1, 1, 8, 8], strides = [1, 1, 1, 1]} : vector<1x4x8x8xf32> to vector<1x1x8x8xf32>
    %194 = vector.shape_cast %193 : vector<1x1x8x8xf32> to vector<1x8x8xf32>
    %195 = vector.broadcast %192 : f32 to vector<1x8x8xf32>
    %196 = arith.mulf %195, %194 : vector<1x8x8xf32>
    %197 = arith.addf %191, %196 : vector<1x8x8xf32>
    %c6_69 = arith.constant 6 : index
    %c3_70 = arith.constant 3 : index
    %198 = memref.load %arg3[%c6_69, %c3_70] : memref<8x4xf32, #tpu.memory_space<smem>>
    %199 = vector.extract_strided_slice %10 {offsets = [0, 3, 0, 0], sizes = [1, 1, 8, 8], strides = [1, 1, 1, 1]} : vector<1x4x8x8xf32> to vector<1x1x8x8xf32>
    %200 = vector.shape_cast %199 : vector<1x1x8x8xf32> to vector<1x8x8xf32>
    %201 = vector.broadcast %198 : f32 to vector<1x8x8xf32>
    %202 = arith.mulf %201, %200 : vector<1x8x8xf32>
    %203 = arith.addf %197, %202 : vector<1x8x8xf32>
    %c6_71 = arith.constant 6 : index
    %204 = memref.load %arg4[%c6_71] : memref<8xf32, #tpu.memory_space<smem>>
    %205 = vector.broadcast %204 : f32 to vector<1x8x8xf32>
    %206 = arith.addf %203, %205 : vector<1x8x8xf32>
    %cst_72 = arith.constant 0.000000e+00 : f32
    %207 = vector.broadcast %cst_72 : f32 to vector<1x8x8xf32>
    %c7 = arith.constant 7 : index
    %c0_73 = arith.constant 0 : index
    %208 = memref.load %arg3[%c7, %c0_73] : memref<8x4xf32, #tpu.memory_space<smem>>
    %209 = vector.extract_strided_slice %10 {offsets = [0, 0, 0, 0], sizes = [1, 1, 8, 8], strides = [1, 1, 1, 1]} : vector<1x4x8x8xf32> to vector<1x1x8x8xf32>
    %210 = vector.shape_cast %209 : vector<1x1x8x8xf32> to vector<1x8x8xf32>
    %211 = vector.broadcast %208 : f32 to vector<1x8x8xf32>
    %212 = arith.mulf %211, %210 : vector<1x8x8xf32>
    %213 = arith.addf %207, %212 : vector<1x8x8xf32>
    %c7_74 = arith.constant 7 : index
    %c1_75 = arith.constant 1 : index
    %214 = memref.load %arg3[%c7_74, %c1_75] : memref<8x4xf32, #tpu.memory_space<smem>>
    %215 = vector.extract_strided_slice %10 {offsets = [0, 1, 0, 0], sizes = [1, 1, 8, 8], strides = [1, 1, 1, 1]} : vector<1x4x8x8xf32> to vector<1x1x8x8xf32>
    %216 = vector.shape_cast %215 : vector<1x1x8x8xf32> to vector<1x8x8xf32>
    %217 = vector.broadcast %214 : f32 to vector<1x8x8xf32>
    %218 = arith.mulf %217, %216 : vector<1x8x8xf32>
    %219 = arith.addf %213, %218 : vector<1x8x8xf32>
    %c7_76 = arith.constant 7 : index
    %c2_77 = arith.constant 2 : index
    %220 = memref.load %arg3[%c7_76, %c2_77] : memref<8x4xf32, #tpu.memory_space<smem>>
    %221 = vector.extract_strided_slice %10 {offsets = [0, 2, 0, 0], sizes = [1, 1, 8, 8], strides = [1, 1, 1, 1]} : vector<1x4x8x8xf32> to vector<1x1x8x8xf32>
    %222 = vector.shape_cast %221 : vector<1x1x8x8xf32> to vector<1x8x8xf32>
    %223 = vector.broadcast %220 : f32 to vector<1x8x8xf32>
    %224 = arith.mulf %223, %222 : vector<1x8x8xf32>
    %225 = arith.addf %219, %224 : vector<1x8x8xf32>
    %c7_78 = arith.constant 7 : index
    %c3_79 = arith.constant 3 : index
    %226 = memref.load %arg3[%c7_78, %c3_79] : memref<8x4xf32, #tpu.memory_space<smem>>
    %227 = vector.extract_strided_slice %10 {offsets = [0, 3, 0, 0], sizes = [1, 1, 8, 8], strides = [1, 1, 1, 1]} : vector<1x4x8x8xf32> to vector<1x1x8x8xf32>
    %228 = vector.shape_cast %227 : vector<1x1x8x8xf32> to vector<1x8x8xf32>
    %229 = vector.broadcast %226 : f32 to vector<1x8x8xf32>
    %230 = arith.mulf %229, %228 : vector<1x8x8xf32>
    %231 = arith.addf %225, %230 : vector<1x8x8xf32>
    %c7_80 = arith.constant 7 : index
    %232 = memref.load %arg4[%c7_80] : memref<8xf32, #tpu.memory_space<smem>>
    %233 = vector.broadcast %232 : f32 to vector<1x8x8xf32>
    %234 = arith.addf %231, %233 : vector<1x8x8xf32>
    %235 = vector.shape_cast %38 : vector<1x8x8xf32> to vector<1x1x8x8xf32>
    %236 = vector.shape_cast %66 : vector<1x8x8xf32> to vector<1x1x8x8xf32>
    %237 = vector.shape_cast %94 : vector<1x8x8xf32> to vector<1x1x8x8xf32>
    %238 = vector.shape_cast %122 : vector<1x8x8xf32> to vector<1x1x8x8xf32>
    %239 = vector.shape_cast %150 : vector<1x8x8xf32> to vector<1x1x8x8xf32>
    %240 = vector.shape_cast %178 : vector<1x8x8xf32> to vector<1x1x8x8xf32>
    %241 = vector.shape_cast %206 : vector<1x8x8xf32> to vector<1x1x8x8xf32>
    %242 = vector.shape_cast %234 : vector<1x8x8xf32> to vector<1x1x8x8xf32>
    %243 = tpu.concatenate %235, %236, %237, %238, %239, %240, %241, %242 in 1 : vector<1x1x8x8xf32>, vector<1x1x8x8xf32>, vector<1x1x8x8xf32>, vector<1x1x8x8xf32>, vector<1x1x8x8xf32>, vector<1x1x8x8xf32>, vector<1x1x8x8xf32>, vector<1x1x8x8xf32> -> vector<1x8x8x8xf32>
    %c0_81 = arith.constant 0 : index
    %c0_82 = arith.constant 0 : index
    %c0_83 = arith.constant 0 : index
    %c0_84 = arith.constant 0 : index
    %244 = vector.load %arg6[%c0_81, %c0_82, %c0_83, %c0_84] : memref<1x8x8x8xf32, #tpu.memory_space<vmem>>, vector<1x8x8x8xf32>
    tpu.vector_store %arg6[%c0_81, %c0_82, %c0_83, %c0_84], %243 {strides = array<i32>} : memref<1x8x8x8xf32, #tpu.memory_space<vmem>>, vector<1x8x8x8xf32>,
    return
  }
  func.func @transform_0(%arg0: i32) -> (i32, i32) {
    %c0_i32 = arith.constant 0 : i32
    %c0_i32_0 = arith.constant 0 : i32
    %c0_i32_1 = arith.constant 0 : i32
    return %c0_i32, %c0_i32_0 : i32, i32
  }
  func.func @transform_1(%arg0: i32) -> (i32, i32) {
    %c0_i32 = arith.constant 0 : i32
    %c0_i32_0 = arith.constant 0 : i32
    %c0_i32_1 = arith.constant 0 : i32
    return %c0_i32, %c0_i32_0 : i32, i32
  }
  func.func @transform_2(%arg0: i32) -> (i32, i32) {
    %c0_i32 = arith.constant 0 : i32
    %c0_i32_0 = arith.constant 0 : i32
    %c0_i32_1 = arith.constant 0 : i32
    return %c0_i32, %c0_i32_0 : i32, i32
  }
  func.func @transform_3(%arg0: i32) -> i32 {
    %c0_i32 = arith.constant 0 : i32
    %c0_i32_0 = arith.constant 0 : i32
    return %c0_i32 : i32
  }
  func.func @transform_4(%arg0: i32) -> (i32, i32, i32, i32) {
    %c0_i32 = arith.constant 0 : i32
    %c0_i32_0 = arith.constant 0 : i32
    %c0_i32_1 = arith.constant 0 : i32
    %c0_i32_2 = arith.constant 0 : i32
    return %arg0, %c0_i32, %c0_i32_0, %c0_i32_1 : i32, i32, i32, i32
  }
  func.func @transform_5(%arg0: i32) -> (i32, i32, i32, i32) {
    %c0_i32 = arith.constant 0 : i32
    %c0_i32_0 = arith.constant 0 : i32
    %c0_i32_1 = arith.constant 0 : i32
    %c0_i32_2 = arith.constant 0 : i32
    return %arg0, %c0_i32, %c0_i32_0, %c0_i32_1 : i32, i32, i32, i32
  }
}

</mosaic_0001>

<bundles_post_ra>
// kernel: tpu_custom_call.1
= control target key start
LH: loop header
LB: loop body
LE: loop exit
PB: predicated region body
PF: predicated region fallthrough
CT: control target
= control target key end

     0   :  { %s1977_s0 = inlined_call_operand.vmem [shape: f32[8,16], index: 0, kind: input, shape index: {}]   ;;  %s1978_s1 = inlined_call_operand.vmem [shape: f32[16,8], index: 1, kind: input, shape index: {}]   ;;  %s1979_s2 = inlined_call_operand.vmem [shape: f32[8,4], index: 2, kind: input, shape index: {}]   ;;  %s1980_s3 = inlined_call_operand.vmem [shape: f32[8], index: 3, kind: input, shape index: {}]   ;;  %s1981_s4 = inlined_call_operand.hbm [shape: f32[2,4,16,16], index: 4, kind: input, shape index: {}]   ;;  %s1982_s5 = inlined_call_operand.hbm [shape: f32[2,8,8,8], index: 5, kind: output, shape index: {}]  }
   0x1   :  { %2007 = sst [smem:[#allocation33_spill]] %s1977_s0 }
   0x2   :  { %2008 = sst [smem:[#allocation34_spill]] %s1978_s1 }
   0x3   :  { %2009 = sst [smem:[#allocation35_spill]] %s1979_s2 }
   0x4   :  { %2010 = sst [smem:[#allocation36_spill]] %s1980_s3 }
   0x5   :  { %2011 = sst [smem:[#allocation37_spill]] %s1981_s4 }
   0x6   :  { %2012 = sst [smem:[#allocation38_spill]] %s1982_s5 }
   0x7   :  { %10 = vsyncpa [#allocation5], 0 }
   0x8   :  { %11 = vsyncpa [#allocation7], 0 }
   0x9   :  { %12 = vsyncpa [#allocation3], 0 }
   0xa   :  { %14 = vsyncpa [#allocation3 + $0x1], 0 }
   0xb   :  { %15 = vsyncpa [#allocation4], 0 }
   0xc   :  { %17 = vsyncpa [#allocation4 + $0x1], 0  ;;  %s1592_s18 = smov 0   ;;  %s1594_s19 = smov 0  }
   0xd   :  { %s1596_s20 = smov 0   ;;  %s1598_s21 = smov 0  }
   0xe LB: > { %2013 = sst [smem:[#allocation14_spill]] %s1537_s18  ;;  %s1613_s22 = sadd.s32 4294967295, %s1549_s21   ;;  %s1549_s21 = sphi %s1598_s21, %s2072_s21   ;;  %s1545_s20 = sphi %s1596_s20, %s2075_s20   ;;  %s1541_s19 = sphi %s1594_s19, %s2074_s19   ;;  %s1537_s18 = sphi %s1592_s18, %s2073_s18  }
   0xf   : > { %2014 = sst [smem:[#allocation15_spill]] %s1541_s19  ;;  %s1159_s23 = sadd.s32 4294967294, %s1549_s21  }
  0x10   : > { %2015 = sst [smem:[#allocation16_spill]] %s1545_s20  ;;  %s1617_s24 = sadd.s32 1, %s1549_s21  }
  0x11   : > { %2016 = sst [smem:[#allocation17_spill]] %s1549_s21  ;;  %s114_s25 = sadd.s32 1, %s1545_s20 }
  0x12   : > { %2017 = sst [smem:[#allocation18_spill]] %s1613_s22  ;;  %s111_s26 = ssub.s32 %s1549_s21, %s1617_s24 }
  0x13   : > { %2018 = sst [smem:[#allocation19_spill]] %s1617_s24  ;;  %p121_p0 = scmp.ne.s32.totalorder %s1545_s20, %s1541_s19 }
  0x14   : > { %p112_p1 = scmp.eq.s32.totalorder %s111_s26, 0  ;;  %p122_p2 = scmp.eq.s32.totalorder %s1549_s21, 0 }
  0x15   : > { %p127_p3 = scmp.ne.s32.totalorder %s1541_s19, %s1537_s18  ;;  %p1983_p4 = scmp.eq.s32.totalorder %s1613_s22, 0 }
  0x16   : > { %s1629_s27 = scalar_select %p112_p1, %s1545_s20, %s114_s25  }
  0x17   : > { %p1631_p5 = por %p122_p2, %p121_p0  ;;  %p1637_p6 = por %p1983_p4, %p127_p3 }
  0x18   : > { %2019 = sst [smem:[#allocation20_spill]] %s1629_s27  ;;  %p151_p7 = scmp.eq.s32.totalorder %s1613_s22, 1 }
  0x19   : > { %s2021_s29 = scalar_select %p1637_p6, 1, 0 }
  0x1a   : > { %p157_p8 = scmp.eq.s32.totalorder %s1159_s23, 1  ;;  %p1160_p9 = scmp.ge.s32.totalorder %s1549_s21, 1 }
  0x1b   : > { %p164_p10 = scmp.lt.s32.totalorder %s1549_s21, 3  ;;  %p1644_p11 = por %p151_p7, %p121_p0 }
  0x1c   : > { %p1648_p12 = por %p157_p8, %p127_p3  ;;  %s2027_s2 = sld [smem:[#allocation35_spill]] }
  0x1d   : > { %s2022_s30 = scalar_select %p1644_p11, 1, 0 }
  0x1e   : > { %s2024_s6 = scalar_select %p1648_p12, 1, 0 }
  0x1f   : > { %2023 = sst [smem:[#allocation21_spill]] %s2022_s30  ;;  %p1652_p13 = pnand %p1160_p9, %p164_p10 }
  0x20   : > { %2025 = sst [smem:[#allocation22_spill]] %s2024_s6  ;;  %p1370_p2 = scmp.lt.s32.totalorder %s1549_s21, 2 }
  0x21   : > { %s2026_s7 = scalar_select %p1652_p13, 1, 0 }
  0x22   : > { %s183_s10 = sshll.u32 %s2027_s2, 4  ;;  %p1353_p1 = pneg %p1652_p13  ;;  %s184_s10 = int_to_ptr.vmem [resolvable:$true] %s183_s10 }
  0x23   : > { %s2029_s3 = sld [smem:[#allocation36_spill]]  ;;  %p1674_p3 = pnand %p1370_p2, %p1631_p5 }
  0x24   : > { %p1665_p7 = pnand %p1353_p1, %p1983_p4  ;;  %s1415_s16 = scalar_lea.vmem %s184_s10, 128 }
  0x25   : > { %s2030_s15 = scalar_select %p1674_p3, 1, 0 }
  0x26   : > { %p1416_p8 = scmp.ne.s32.totalorder %s184_s10, %s1415_s16  ;;  %p1417_p9 = pneg %p1665_p7 }
  0x27   : > { %p1423_p0 = scmp.lt.s32.totalorder %s184_s10, %s184_s10  ;;  %p1424_p4 = scmp.lt.s32.totalorder %s1415_s16, %s1415_s16 }
  0x28   : > { %p1418_p10 = pnand %p1417_p9, %p1416_p8 }
  0x29   : > { %s194_s14 = sshll.u32 %s2029_s3, 4  ;;  %p1425_p12 = por %p1424_p4, %p1423_p0  ;;  %s195_s14 = int_to_ptr.vmem [resolvable:$true] %s194_s14 }
  0x2a   : > { %p1419_p1 = pneg %p1418_p10 }
  0x2c   : > { %p1426_p11 = pnand %p1425_p12, %p1419_p1 }
  0x2e   : > { %1429 = shalt.err (!%p1426_p11)
}
  0x2f   : > { %s1551_s17 = smov [#allocation2]   ;;  %s205_s23 = sand.u32 1, %s1545_s20  }
  0x30   : > { %1356 = dma.vmem_to_smem (!%p1665_p7), %s184_s10, 128, %s1551_s17, [#allocation5]  }
  0x31   : > { %s1430_s25 = scalar_lea.vmem %s195_s14, 16  ;;  %p1438_p8 = scmp.lt.s32.totalorder %s195_s14, %s195_s14 }
  0x32   : > { %p1431_p5 = scmp.ne.s32.totalorder %s195_s14, %s1430_s25  ;;  %p1439_p10 = scmp.lt.s32.totalorder %s1430_s25, %s1430_s25 }
  0x34   : > { %p1433_p2 = pnand %p1431_p5, %p1417_p9  ;;  %p1440_p13 = por %p1439_p10, %p1438_p8 }
  0x36   : > { %p1434_p6 = pneg %p1433_p2 }
  0x38   : > { %p1441_p3 = pnand %p1440_p13, %p1434_p6 }
  0x3a   : > { %1444 = shalt.err (!%p1441_p3)
}
  0x3b   : > { %s1552_s26 = smov [#allocation6]   ;;  %s1164_s28 = sshll.u32 %s205_s23, 6 }
  0x3c   : > { %1359 = dma.vmem_to_smem (!%p1665_p7), %s195_s14, 16, %s1552_s26, [#allocation7]  }
  0x3d   : > { %s1227_s8 = sshll.u32 %s1549_s21, 10  ;;  %s2031_s4 = sld [smem:[#allocation37_spill]] }
  0x3e   : > { %s209_s13 = scalar_lea.vmem [#allocation8], %s1164_s28  ;;  %s1699_s11 = scalar_lea.sflag [#allocation3], %s205_s23 }
  0x3f   : > { %s216_s16 = sshll.u32 %s209_s13, 4  ;;  %p2032_p6 = scmp.ne.s32.totalorder %s2030_s15, 0  ;;  %s1697_s16 = int_to_ptr.vmem [resolvable:$true] %s216_s16 }
  0x41   : > { %p1447_p11 = pneg %p2032_p6 }
  0x43   : > { %s1695_s12 = scalar_lea.hbm %s2031_s4, %s1227_s8  ;;  %s1450_s26 = scalar_lea.hbm %s2031_s4, 2048 }
  0x44   : > { %s1445_s17 = scalar_lea.hbm %s1695_s12, 1024  ;;  %p1451_p0 = scmp.lt.u32.totalorder %s1695_s12, %s2031_s4 }
  0x45   : > { %p1446_p4 = scmp.ne.s32.totalorder %s1695_s12, %s1445_s17  ;;  %p1452_p7 = scmp.lt.u32.totalorder %s1450_s26, %s1445_s17 }
  0x46   : > { %p1454_p9 = scmp.lt.u32.totalorder %s1445_s17, %s1695_s12 }
  0x47   : > { %p1448_p12 = pnand %p1447_p11, %p1446_p4  ;;  %p1453_p3 = por %p1452_p7, %p1451_p0 }
  0x49   : > { %p1449_p13 = pneg %p1448_p12  ;;  %p1455_p1 = por %p1454_p9, %p1453_p3 }
  0x4b   : > { %p1456_p5 = pnand %p1455_p1, %p1449_p13 }
  0x4d   : > { %1459 = shalt.err (!%p1456_p5)
}
  0x4e   : > { %s1460_s23 = scalar_lea.vmem %s1697_s16, 1024  ;;  %s1553_s28 = smov [#allocation8]  }
  0x4f   : > { %p1461_p2 = scmp.ne.s32.totalorder %s1697_s16, %s1460_s23  ;;  %s1465_s10 = sshll.u32 %s1553_s28, 4  ;;  %s1466_s10 = int_to_ptr.vmem [resolvable:$false] %s1465_s10 }
  0x50   : > { %s1467_s13 = scalar_lea.vmem %s1466_s10, 2048  ;;  %p1468_p4 = scmp.lt.s32.totalorder %s1697_s16, %s1466_s10 }
  0x51   : > { %p1463_p8 = pnand %p1461_p2, %p1447_p11  ;;  %p1469_p12 = scmp.lt.s32.totalorder %s1467_s13, %s1460_s23 }
  0x53   : > { %p1464_p10 = pneg %p1463_p8  ;;  %p1470_p0 = por %p1469_p12, %p1468_p4 }
  0x55   : > { %p1471_p7 = pnand %p1470_p0, %p1464_p10 }
  0x57   : > { %1474 = shalt.err (!%p1471_p7)
}
  0x58   : > { %s1554_s17 = smov 128   ;;  %s1555_s14 = smov 8  }
  0x59   : > { %1363 = dma.hbm_to_vmem [thread:$0]  (!%p2032_p6), %s1695_s12, 1024, %s1697_s16, %s1699_s11, %s1554_s17, %s1554_s17, %s1555_s14  }
  0x5a   : > { %p2033_p11 = scmp.ne.s32.totalorder %s2026_s7, 0 }
  0x5c   : > { %228 = sbr.rel (%p2033_p11) target bundleno = 589 (0x24d), region = 40 }
  0x63   : > { %p2034_p13 = scmp.eq.s32.totalorder %s1613_s22, 0 }
  0x65   : > { %1520 = dma.done.wait (%p2034_p13), [#allocation5], 128   ;;  %p2035_p3 = pmov %p2034_p13 }
  0x67   : > { %1522 = vsyncadd (%p2035_p3), [#allocation5], 4294967168  ;;  %p2036_p9 = pmov %p2035_p3 }
  0x68   : > { %p2037_p1 = pmov %p2035_p3 }
  0x69   : > { %1524 = dma.done.wait (%p2036_p9), [#allocation7], 16  }
  0x6a   : > { %1526 = vsyncadd (%p2037_p1), [#allocation7], 4294967280  ;;  %s1738_s25 = sand.u32 1, %s1541_s19   ;;  %p2039_p6 = scmp.ne.s32.totalorder %s2021_s29, 0 }
  0x6b   : > { %2038 = sst [smem:[#allocation23_spill]] %s1738_s25  ;;  %s1988_s7 = sshll.u32 %s1738_s25, 6 }
  0x6c   : > { %s239_s15 = scalar_lea.sflag [#allocation3], %s1738_s25  ;;  %s242_s12 = scalar_lea.vmem [#allocation8], %s1988_s7 }
  0x6d   : > { %1528 = dma.done.wait (%p2039_p6), %s239_s15, 1024  }
  0x6e   : > { %1530 = vsyncadd (%p2039_p6), %s239_s15, 4294966272 }
  0x6f   : > { %247 = sfence }
  0x70   : > { %s2040_s1 = sld [smem:[#allocation34_spill]]  ;;  %v270_v2 = vld [vmem:[%s242_s12] sm:$0xff]  ;;  %vm280_vm0 = vcmask 130048   ;;  %v272_v4 = vld [vmem:[%s242_s12 + $0x10] sm:$0xff]  ;;  %v271_v5 = vld [vmem:[%s242_s12 + $0x8] sm:$0xff]  ;;  %v1556_v11 = vmov 0.0|0.0  }
  0x71   : > { %1261 = vmatprep.mubr.msk.f32.mxu0 %vm280_vm0, %v270_v2  ;;  %1268 = vmatprep.mubr.msk.f32.mxu1 %vm280_vm0, %v272_v4  ;;  %v273_v6 = vld [vmem:[%s242_s12 + $0x18] sm:$0xff]  ;;  %v274_v7 = vld [vmem:[%s242_s12 + $0x20] sm:$0xff]  ;;  %v276_v8 = vld [vmem:[%s242_s12 + $0x30] sm:$0xff]  ;;  %vm1557_vm1 = vmmov 0   ;;  %v1558_v12 = vmov 0.0   ;;  %s2041_s0 = sld [smem:[#allocation33_spill]] }
  0x72   : > { %v275_v9 = vld [vmem:[%s242_s12 + $0x28] sm:$0xff]  ;;  %v277_v10 = vld [vmem:[%s242_s12 + $0x38] sm:$0xff]  ;;  %s1773_s23 = sld [smem:[#allocation2]]  ;;  %s1789_s16 = sld [smem:[#allocation2 + $0x1]]  ;;  %vm1041_vm2 = vcmask 64512  }
  0x73   : > { %s1775_s28 = sld [smem:[#allocation2 + $0x80]]  ;;  %s1791_s11 = sld [smem:[#allocation2 + $0x81]] }
  0x74   : > { %s1777_s10 = sld [smem:[#allocation2 + $0x100]]  ;;  %s1793_s26 = sld [smem:[#allocation2 + $0x101]] }
  0x75   : > { %s1779_s13 = sld [smem:[#allocation2 + $0x180]]  ;;  %s1795_s8 = sld [smem:[#allocation2 + $0x181]] }
  0x76   : > { %v278_v0 = vld [vmem:[%s2040_s1] sm:$0xff]  ;;  %v279_v1 = vld [vmem:[%s2040_s1 + $0x8] sm:$0xff]  ;;  %s1781_s17 = sld [smem:[#allocation2 + $0x200]]  ;;  %s1797_s29 = sld [smem:[#allocation2 + $0x201]] }
  0x77   : > { %v1313_v3 = vpack.c.bf16 %v279_v1, %v278_v0  ;;  %v605_v21 = vld [vmem:[%s2041_s0] sm:$0xff]  ;;  %s1783_s14 = sld [smem:[#allocation2 + $0x280]]  ;;  %s1799_s9 = sld [smem:[#allocation2 + $0x281]] }
  0x78   : > { %s1785_s15 = sld [smem:[#allocation2 + $0x300]]  ;;  %s1801_s7 = sld [smem:[#allocation2 + $0x301]]  ;;  %v890_v26 = vstv %s1773_s23  ;;  %v894_v34 = vstv %s1789_s16 }
  0x79   : > { %1314 = vmatprep.subr.bf16.mxu0 %v1313_v3  ;;  %1318 = vmatprep.subr.bf16.mxu1 %v1313_v3  ;;  %s1787_s12 = sld [smem:[#allocation2 + $0x380]]  ;;  %s1803_s0 = sld [smem:[#allocation2 + $0x381]]  ;;  %v909_v27 = vstv %s1775_s28  ;;  %v913_v35 = vstv %s1791_s11 }
  0x7a   : > { %1316 = vmatpush3.bf16.msra.mxu0 %v1313_v3  ;;  %1320 = vmatpush3.bf16.msra.mxu1 %v1313_v3  ;;  %s1805_s1 = sld [smem:[#allocation2 + $0x2]]  ;;  %s1821_s21 = sld [smem:[#allocation2 + $0x3]]  ;;  %v928_v28 = vstv %s1777_s10  ;;  %v932_v36 = vstv %s1793_s26 }
  0x7b   : > { %1322 = vmatprep.subr.bf16.mxu0 %v1313_v3  ;;  %1326 = vmatprep.subr.bf16.mxu1 %v1313_v3  ;;  %s1807_s2 = sld [smem:[#allocation2 + $0x82]]  ;;  %s1823_s6 = sld [smem:[#allocation2 + $0x83]]  ;;  %v947_v29 = vstv %s1779_s13  ;;  %v951_v37 = vstv %s1795_s8 }
  0x7c   : > { %s1809_s3 = sld [smem:[#allocation2 + $0x102]]  ;;  %s1825_s18 = sld [smem:[#allocation2 + $0x103]]  ;;  %v966_v30 = vstv %s1781_s17  ;;  %v970_v38 = vstv %s1797_s29 }
  0x7d   : > { %1262 = vmatmul.mubr.msk.f32.vlgmr.msra.gmra.mrb[0].mxu0 %vm280_vm0, %v271_v5  ;;  %1269 = vmatmul.mubr.msk.f32.vlgmr.msra.gmra.mrb[0].mxu1 %vm280_vm0, %v273_v6  ;;  %s1811_s4 = sld [smem:[#allocation2 + $0x182]]  ;;  %s1827_s30 = sld [smem:[#allocation2 + $0x183]]  ;;  %v985_v31 = vstv %s1783_s14  ;;  %v989_v39 = vstv %s1799_s9 }
  0x7e   : > { %1324 = vmatpush3.bf16.msra.mxu0 %v1313_v3  ;;  %1328 = vmatpush3.bf16.msra.mxu1 %v1313_v3  ;;  %s1813_s27 = sld [smem:[#allocation2 + $0x202]]  ;;  %s1829_s5 = sld [smem:[#allocation6]]  ;;  %v1004_v32 = vstv %s1785_s15  ;;  %v1008_v40 = vstv %s1801_s7 }
  0x7f   : > { %1275 = vmatprep.mubr.msk.f32.mxu0 %vm280_vm0, %v274_v7  ;;  %1282 = vmatprep.mubr.msk.f32.mxu1 %vm280_vm0, %v276_v8  ;;  %s1815_s20 = sld [smem:[#allocation2 + $0x282]]  ;;  %s1831_s25 = sld [smem:[#allocation6 + $0x1]]  ;;  %v1023_v33 = vstv %s1787_s12  ;;  %v1027_v41 = vstv %s1803_s0 }
  0x80   : > { %1329 = vmatprep.subr.bf16.mxu0 %v1556_v11  ;;  %1332 = vmatprep.subr.bf16.mxu1 %v1556_v11  ;;  %s1817_s19 = sld [smem:[#allocation2 + $0x302]]  ;;  %s1857_s23 = sld [smem:[#allocation2 + $0x383]]  ;;  %v898_v42 = vstv %s1805_s1  ;;  %v902_v50 = vstv %s1821_s21 }
  0x81   : > { %1276 = vmatmul.mubr.msk.f32.vlgmr.msra.gmra.mrb[2].mxu0 %vm280_vm0, %v275_v9  ;;  %1283 = vmatmul.mubr.msk.f32.vlgmr.msra.gmra.mrb[2].mxu1 %vm280_vm0, %v277_v10  ;;  %s1819_s24 = sld [smem:[#allocation2 + $0x382]]  ;;  %2044 = sst [smem:[#allocation26_spill]] %s1823_s6  ;;  %v917_v43 = vstv %s1807_s2 }
  0x82   : > { %1289 = vmatprep.mubr.msk.f32.mxu0 %vm1557_vm1, %v1558_v12  ;;  %1296 = vmatprep.mubr.msk.f32.mxu1 %vm1557_vm1, %v1558_v12  ;;  %2045 = sst [smem:[#allocation27_spill]] %s1825_s18  ;;  %s1833_s22 = sld [smem:[#allocation6 + $0x2]]  ;;  %v936_v44 = vstv %s1809_s3 }
  0x83   : > { %2046 = sst [smem:[#allocation28_spill]] %s1827_s30  ;;  %s1839_s6 = sld [smem:[#allocation6 + $0x4]]  ;;  %v955_v45 = vstv %s1811_s4 }
  0x84   : > { %s1841_s18 = sld [smem:[#allocation2 + $0x283]]  ;;  %s1843_s30 = sld [smem:[#allocation6 + $0x5]]  ;;  %v974_v46 = vstv %s1813_s27  ;;  %v906_v54 = vstv %s1829_s5 }
  0x85   : > { %s1859_s10 = sld [smem:[#allocation6 + $0x7]]  ;;  %s2055_s17 = sld [smem:[#allocation28_spill]]  ;;  %v993_v47 = vstv %s1815_s20  ;;  %v925_v55 = vstv %s1831_s25 }
  0x86   : > { %2042 = sst [smem:[#allocation24_spill]] %s1817_s19  ;;  %s1837_s19 = sld [smem:[#allocation2 + $0x203]]  ;;  %v1035_v2 = vstv %s1857_s23 }
  0x87   : > { %2043 = sst [smem:[#allocation25_spill]] %s1819_s24  ;;  %s2051_s28 = sld [smem:[#allocation24_spill]] }
  0x88   : > { %s1835_s24 = sld [smem:[#allocation6 + $0x3]]  ;;  %v944_v56 = vstv %s1833_s22  ;;  %s2060_s0 = sld [smem:[#allocation18_spill]] }
  0x89   : > { %s2052_s13 = sld [smem:[#allocation25_spill]]  ;;  %v982_v59 = vstv %s1839_s6  ;;  %s2061_s1 = sld [smem:[#allocation23_spill]] }
  0x8a   : > { %v997_v60 = vstv %s1841_s18  ;;  %v1001_v61 = vstv %s1843_s30  ;;  %s2063_s21 = sld [smem:[#allocation38_spill]]  ;;  %s1559_s30 = smov [#allocation9]  }
  0x8b   : > { %v959_v53 = vstv %s2055_s17  ;;  %v1039_v3 = vstv %s1859_s10  ;;  %s2065_s7 = sld [smem:[#allocation21_spill]]  ;;  %s1479_s6 = sshll.u32 %s1559_s30, 4  ;;  %s1480_s6 = int_to_ptr.vmem [resolvable:$false] %s1479_s6 }
  0x8c   : > { %2048 = sst [smem:[#allocation30_spill]] %s1837_s19  ;;  %s1851_s19 = sld [smem:[#allocation6 + $0x6]] }
  0x8d   : > { %s2057_s15 = sld [smem:[#allocation30_spill]]  ;;  %v1012_v48 = vstv %s2051_s28  ;;  %s1481_s25 = scalar_lea.vmem %s1480_s6, 2048 }
  0x8e   : > { %2047 = sst [smem:[#allocation29_spill]] %s1835_s24  ;;  %s1849_s24 = sld [smem:[#allocation2 + $0x303]] }
  0x8f   : > { %s2056_s14 = sld [smem:[#allocation29_spill]]  ;;  %v1031_v49 = vstv %s2052_s13  ;;  %s1228_s2 = sshll.u32 %s2060_s0, 10 }
  0x90   : > { %s2062_s3 = sshll.u32 %s2061_s1, 6  ;;  %s1915_s27 = scalar_lea.hbm %s2063_s21, %s1228_s2 }
  0x91   : > { %s269_s4 = scalar_lea.vmem [#allocation9], %s2062_s3  ;;  %s1051_s5 = scalar_lea.sflag [#allocation4], %s2061_s1 }
  0x92   : > { %2050 = sst [smem:[#allocation32_spill]] %s1851_s19  ;;  %s2054_s19 = sld [smem:[#allocation27_spill]] }
  0x93   : > { %s2059_s16 = sld [smem:[#allocation32_spill]]  ;;  %v978_v58 = vstv %s2057_s15  ;;  %s1064_s18 = sshll.u32 %s269_s4, 4  ;;  %s1917_s18 = int_to_ptr.vmem [resolvable:$true] %s1064_s18 }
  0x94   : > { %2049 = sst [smem:[#allocation31_spill]] %s1849_s24  ;;  %s2053_s24 = sld [smem:[#allocation26_spill]] }
  0x95   : > { %s2058_s12 = sld [smem:[#allocation31_spill]]  ;;  %v963_v57 = vstv %s2056_s14  ;;  %s1475_s22 = scalar_lea.vmem %s1917_s18, 1024 }
  0x96   : > { %p1476_p5 = scmp.ne.s32.totalorder %s1917_s18, %s1475_s22  ;;  %p2066_p2 = scmp.ne.s32.totalorder %s2065_s7, 0 }
  0x97   : > { %p1482_p4 = scmp.lt.s32.totalorder %s1917_s18, %s1480_s6  ;;  %p1483_p12 = scmp.lt.s32.totalorder %s1481_s25, %s1475_s22 }
  0x98   : > { %v940_v52 = vstv %s2054_s19  ;;  %p1477_p8 = pnand %p1476_p5, %p2066_p2 }
  0x99   : > { %v1020_v1 = vstv %s2059_s16  ;;  %p1484_p0 = por %p1483_p12, %p1482_p4 }
  0x9a   : > { %v921_v51 = vstv %s2053_s24  ;;  %s2064_s24 = smov %s2063_s21  ;;  %p1478_p10 = pneg %p1477_p8 }
  0x9b   : > { %v1016_v0 = vstv %s2058_s12 }
  0x9c   : > { %p1485_p7 = pnand %p1484_p0, %p1478_p10 }
 0x150   : > { %v1263_v13 = vpop.f32.mrb[0].mxu0  ;;  %v1270_v14 = vpop.f32.mrb[0].mxu1 }
 0x151   : > { %v353_v15 = vpop.f32.mrb[1].mxu0  ;;  %v434_v16 = vpop.f32.mrb[1].mxu1 }
 0x152   : > { %v1330_v17 = vpack.c.bf16 %v1263_v13, %v353_v15  ;;  %v1333_v18 = vpack.c.bf16 %v1270_v14, %v434_v16 }
 0x154   : > { %v1277_v19 = vpop.f32.mrb[2].mxu0  ;;  %1331 = vmatpush3.bf16.msra.mxu0 %v1330_v17  ;;  %v1284_v20 = vpop.f32.mrb[2].mxu1  ;;  %1334 = vmatpush3.bf16.msra.mxu1 %v1333_v18 }
 0x155   : > { %v515_v22 = vpop.f32.mrb[3].mxu0  ;;  %v596_v23 = vpop.f32.mrb[3].mxu1  ;;  %1335 = vmatprep.subr.bf16.mxu0 %v1556_v11  ;;  %1338 = vmatprep.subr.bf16.mxu1 %v1556_v11 }
 0x156   : > { %v1336_v24 = vpack.c.bf16 %v1277_v19, %v515_v22  ;;  %v1339_v25 = vpack.c.bf16 %v1284_v20, %v596_v23 }
 0x157   : > { %1290 = vmatmul.mubr.msk.f32.vlgmr.msra.gmra.mrb[4].mxu0 %vm280_vm0, %v605_v21  ;;  %1297 = vmatmul.mubr.msk.f32.vlgmr.msra.gmra.mrb[4].mxu1 %vm280_vm0, %v605_v21 }
 0x158   : > { %1337 = vmatpush3.bf16.msra.mxu0 %v1336_v24  ;;  %1340 = vmatpush3.bf16.msra.mxu1 %v1339_v25 }
 0x159   : > { %1303 = vmatprep.mubr.msk.f32.mxu0 %vm1557_vm1, %v1558_v12  ;;  %1310 = vmatprep.mubr.msk.f32.mxu1 %vm1557_vm1, %v1558_v12 }
 0x15b   : > { %1304 = vmatmul.mubr.msk.f32.vlgmr.msra.gmra.mrb[6].mxu0 %vm280_vm0, %v605_v21  ;;  %1311 = vmatmul.mubr.msk.f32.vlgmr.msra.gmra.mrb[6].mxu1 %vm280_vm0, %v605_v21 }
 0x22a   : > { %v675_v62 = vpop.f32.mrb[4].mxu0  ;;  %v745_v63 = vpop.f32.mrb[4].mxu1 }
 0x22b   : > { %v891_v4 = vmul.f32 %v890_v26, %v675_v62  ;;  %v910_v5 = vmul.f32 %v909_v27, %v675_v62  ;;  %v929_v6 = vmul.f32 %v928_v28, %v675_v62  ;;  %v948_v7 = vmul.f32 %v947_v29, %v675_v62  ;;  %v1291_v8 = vpop.f32.mrb[5].mxu0  ;;  %v1298_v9 = vpop.f32.mrb[5].mxu1 }
 0x22c   : > { %v967_v10 = vmul.f32 %v966_v30, %v675_v62  ;;  %v986_v11 = vmul.f32 %v985_v31, %v675_v62  ;;  %v1005_v12 = vmul.f32 %v1004_v32, %v675_v62  ;;  %v1024_v13 = vmul.f32 %v1023_v33, %v675_v62 }
 0x22d   : > { %v895_v14 = vmul.f32 %v894_v34, %v745_v63  ;;  %v914_v15 = vmul.f32 %v913_v35, %v745_v63  ;;  %v933_v16 = vmul.f32 %v932_v36, %v745_v63  ;;  %v952_v17 = vmul.f32 %v951_v37, %v745_v63 }
 0x22e   : > { %v971_v18 = vmul.f32 %v970_v38, %v745_v63  ;;  %v990_v19 = vmul.f32 %v989_v39, %v745_v63  ;;  %v1009_v20 = vmul.f32 %v1008_v40, %v745_v63  ;;  %v1028_v21 = vmul.f32 %v1027_v41, %v745_v63  ;;  %v815_v22 = vpop.f32.mrb[6].mxu0  ;;  %v885_v23 = vpop.f32.mrb[6].mxu1 }
 0x22f   : > { %v896_v24 = vadd.f32 %v895_v14, %v891_v4  ;;  %v915_v25 = vadd.f32 %v914_v15, %v910_v5  ;;  %v934_v26 = vadd.f32 %v933_v16, %v929_v6  ;;  %v953_v27 = vadd.f32 %v952_v17, %v948_v7  ;;  %v1305_v28 = vpop.f32.mrb[7].mxu0  ;;  %v1312_v29 = vpop.f32.mrb[7].mxu1 }
 0x230   : > { %v972_v30 = vadd.f32 %v971_v18, %v967_v10  ;;  %v991_v31 = vadd.f32 %v990_v19, %v986_v11  ;;  %v1010_v32 = vadd.f32 %v1009_v20, %v1005_v12  ;;  %v1029_v33 = vadd.f32 %v1028_v21, %v1024_v13 }
 0x231   : > { %v899_v34 = vmul.f32 %v898_v42, %v815_v22  ;;  %v918_v35 = vmul.f32 %v917_v43, %v815_v22  ;;  %v937_v36 = vmul.f32 %v936_v44, %v815_v22  ;;  %v956_v37 = vmul.f32 %v955_v45, %v815_v22 }
 0x232   : > { %v975_v38 = vmul.f32 %v974_v46, %v815_v22  ;;  %v994_v39 = vmul.f32 %v993_v47, %v815_v22  ;;  %v1013_v40 = vmul.f32 %v1012_v48, %v815_v22  ;;  %v1032_v41 = vmul.f32 %v1031_v49, %v815_v22 }
 0x233   : > { %v900_v62 = vadd.f32 %v899_v34, %v896_v24  ;;  %v919_v63 = vadd.f32 %v918_v35, %v915_v25  ;;  %v938_v4 = vadd.f32 %v937_v36, %v934_v26  ;;  %v957_v5 = vadd.f32 %v956_v37, %v953_v27 }
 0x234   : > { %v976_v6 = vadd.f32 %v975_v38, %v972_v30  ;;  %v995_v7 = vadd.f32 %v994_v39, %v991_v31  ;;  %v1014_v42 = vadd.f32 %v1013_v40, %v1010_v32  ;;  %v1033_v8 = vadd.f32 %v1032_v41, %v1029_v33 }
 0x235   : > { %v903_v43 = vmul.f32 %v902_v50, %v885_v23  ;;  %v922_v44 = vmul.f32 %v921_v51, %v885_v23  ;;  %v941_v45 = vmul.f32 %v940_v52, %v885_v23  ;;  %v960_v46 = vmul.f32 %v959_v53, %v885_v23 }
 0x236   : > { %v979_v47 = vmul.f32 %v978_v58, %v885_v23  ;;  %v998_v48 = vmul.f32 %v997_v60, %v885_v23  ;;  %v1017_v49 = vmul.f32 %v1016_v0, %v885_v23  ;;  %v1036_v9 = vmul.f32 %v1035_v2, %v885_v23 }
 0x237   : > { %v904_v50 = vadd.f32 %v903_v43, %v900_v62  ;;  %v923_v51 = vadd.f32 %v922_v44, %v919_v63  ;;  %v942_v52 = vadd.f32 %v941_v45, %v938_v4  ;;  %v961_v53 = vadd.f32 %v960_v46, %v957_v5 }
 0x238   : > { %v980_v10 = vadd.f32 %v979_v47, %v976_v6  ;;  %v999_v58 = vadd.f32 %v998_v48, %v995_v7  ;;  %v1018_v11 = vadd.f32 %v1017_v49, %v1014_v42  ;;  %v1037_v60 = vadd.f32 %v1036_v9, %v1033_v8 }
 0x239   : > { %v907_v0 = vadd.f32 %v906_v54, %v904_v50  ;;  %v926_v2 = vadd.f32 %v925_v55, %v923_v51  ;;  %v945_v12 = vadd.f32 %v944_v56, %v942_v52  ;;  %v964_v13 = vadd.f32 %v963_v57, %v961_v53 }
 0x23a   : > { %v983_v14 = vadd.f32 %v982_v59, %v980_v10  ;;  %v1002_v54 = vadd.f32 %v1001_v61, %v999_v58  ;;  %v1021_v55 = vadd.f32 %v1020_v1, %v1018_v11  ;;  %v1040_v56 = vadd.f32 %v1039_v3, %v1037_v60 }
 0x23b   : > { %1042 = vst.msk [vmem:[%s269_s4] sm:$0xff] %vm1041_vm2, %v907_v0  ;;  %1043 = vst.msk [vmem:[%s269_s4 + $0x8] sm:$0xff] %vm1041_vm2, %v926_v2 }
 0x23c   : > { %1044 = vst.msk [vmem:[%s269_s4 + $0x10] sm:$0xff] %vm1041_vm2, %v945_v12  ;;  %1045 = vst.msk [vmem:[%s269_s4 + $0x18] sm:$0xff] %vm1041_vm2, %v964_v13 }
 0x23d   : > { %1046 = vst.msk [vmem:[%s269_s4 + $0x20] sm:$0xff] %vm1041_vm2, %v983_v14  ;;  %1047 = vst.msk [vmem:[%s269_s4 + $0x28] sm:$0xff] %vm1041_vm2, %v1002_v54 }
 0x23e   : > { %1048 = vst.msk [vmem:[%s269_s4 + $0x30] sm:$0xff] %vm1041_vm2, %v1021_v55  ;;  %1049 = vst.msk [vmem:[%s269_s4 + $0x38] sm:$0xff] %vm1041_vm2, %v1040_v56 }
 0x23f   : > { %1488 = shalt.err (!%p1485_p7)
}
 0x240   : > { %s1489_s11 = scalar_lea.hbm %s1915_s27, 1024  ;;  %s1493_s29 = scalar_lea.hbm %s2064_s24, 2048 }
 0x241   : > { %p1490_p11 = scmp.ne.s32.totalorder %s1915_s27, %s1489_s11  ;;  %p1494_p9 = scmp.lt.u32.totalorder %s1915_s27, %s2064_s24 }
 0x242   : > { %p1495_p1 = scmp.lt.u32.totalorder %s1493_s29, %s1489_s11  ;;  %p1497_p5 = scmp.lt.u32.totalorder %s1489_s11, %s1915_s27 }
 0x243   : > { %p1491_p13 = pnand %p1490_p11, %p2066_p2 }
 0x244   : > { %p1496_p6 = por %p1495_p1, %p1494_p9 }
 0x245   : > { %p1492_p3 = pneg %p1491_p13 }
 0x246   : > { %p1498_p8 = por %p1497_p5, %p1496_p6 }
 0x248   : > { %p1499_p10 = pnand %p1498_p8, %p1492_p3 }
 0x24a   : > { %1502 = shalt.err (!%p1499_p10)
}
 0x24b   : > { %s1560_s28 = smov 128   ;;  %s1561_s10 = smov 8  }
 0x24c   : > { %1351 = dma.vmem_to_hbm [thread:$0]  (%p2066_p2), %s1917_s18, 1024, %s1915_s27, %s1051_s5, %s1560_s28, %s1560_s28, %s1561_s10  }
 0x24d PF: > { %s2067_s13 = sld [smem:[#allocation14_spill]]  ;;  %s2068_s17 = sld [smem:[#allocation22_spill]] }
 0x24e   : > { %s2069_s14 = sld [smem:[#allocation17_spill]] }
 0x253   : > { %s1079_s15 = sand.u32 1, %s2067_s13   ;;  %p2070_p4 = scmp.ne.s32.totalorder %s2068_s17, 0 }
 0x254   : > { %p2071_p12 = scmp.ge.s32.totalorder %s2069_s14, 2  ;;  %s1080_s12 = scalar_lea.sflag [#allocation4], %s1079_s15 }
 0x256   : > { %p1365_p0 = pnand %p2071_p12, %p2070_p4 }
 0x258   : > { %1532 = dma.done.wait (!%p1365_p0), %s1080_s12, 1024  }
 0x259   : > { %1534 = vsyncadd (!%p1365_p0), %s1080_s12, 4294966272  ;;  %s2072_s21 = sld [smem:[#allocation19_spill]]  ;;  %s2073_s18 = sld [smem:[#allocation15_spill]] }
 0x25a   : > { %s2074_s19 = sld [smem:[#allocation16_spill]]  ;;  %s2075_s20 = sld [smem:[#allocation20_spill]] }
 0x25f   : > { %p20_p7 = scmp.ge.s32.totalorder %s2072_s21, 4  }
 0x261   :  { %22 = sbr.rel (!%p20_p7) target bundleno = 14 (0xe), region = 94 }
 0x268   :  { %1085 = vsyncpa [#allocation3], 1 }
 0x269   :  { %1087 = vsyncpa [#allocation3 + $0x1], 1 }
 0x26a   :  { %1088 = vsyncpa [#allocation4], 1 }
 0x26b   :  { %1090 = vsyncpa [#allocation4 + $0x1], 1 }
 0x26c   :  { %1091 = vsyncpa [#allocation5], 1 }
 0x26d   :  { %1093 = vsyncpa [#allocation5 + $0x1], 1 }
 0x26e   :  { %1094 = vsyncpa [#allocation7], 1 }

</bundles_post_ra>
